<compile_context>
chip_gen: v7x
topology: tpu7x:2x2x1
jax: 0.10.0
libtpu: 0.0.40
codegen_flags: <defaults>
</compile_context>

<pallas_src>
import math
import functools

import jax
import jax.numpy as jnp
from jax.experimental import pallas as pl
from jax.experimental.pallas import tpu as pltpu


# ---------------------------------------------------------------------------
# Gabor bank construction (parameter glue, plain JAX — tiny: C*K*K elems)
# ---------------------------------------------------------------------------
def gabor_depthwise_bank(kernel_size, channel_out, sigma, theta, Lambda, psi, gamma):
    """(C_out, K, K) Gabor filters (the torch bank before its C_in broadcast)."""
    sigma_x = sigma                               # (C_out,)
    sigma_y = sigma / gamma                       # (C_out,)
    xmax = kernel_size // 2
    coords = jnp.arange(-xmax, xmax + 1, dtype=jnp.float32)   # (K,)

    # x varies along the row index (axis -2), y along the column index (axis -1)
    x = coords.reshape(1, -1, 1)                  # (1, K, 1)
    y = coords.reshape(1, 1, -1)                  # (1, 1, K)

    th = theta.reshape(-1, 1, 1)
    sx = sigma_x.reshape(-1, 1, 1)
    sy = sigma_y.reshape(-1, 1, 1)
    lam = Lambda.reshape(-1, 1, 1)
    ps = psi.reshape(-1, 1, 1)

    x_theta = x * jnp.cos(th) + y * jnp.sin(th)
    y_theta = -x * jnp.sin(th) + y * jnp.cos(th)
    gb = jnp.exp(-0.5 * (x_theta ** 2 / sx ** 2 + y_theta ** 2 / sy ** 2)) \
        * jnp.cos(2.0 * math.pi / lam * x_theta + ps)          # (C_out, K, K)
    return gb.astype(jnp.float32)


def gabor_fn(kernel_size, channel_in, channel_out, sigma, theta, Lambda, psi, gamma):
    """Full (C_out, C_in, K, K) bank — faithful to the PyTorch gabor_fn."""
    gb = gabor_depthwise_bank(kernel_size, channel_out, sigma, theta, Lambda, psi, gamma)
    return jnp.broadcast_to(gb[:, None],
                            (channel_out, channel_in, kernel_size, kernel_size))


# ---------------------------------------------------------------------------
# Pallas kernel (the hot path): channel-sum + depthwise KxK on the VPU
# ---------------------------------------------------------------------------
def _gabor_conv_kernel(w_ref, x_ref, o_ref, spad_ref, *,
                       K, stride, padding, dilation, H_out, W_out):
    # w_ref   : (C_out, K*K) f32 in SMEM (scalar-prefetched taps)
    # x_ref   : (1, C_in, H, W) VMEM block (one batch element, NCHW)
    # o_ref   : (1, C_out, H_out, W_out) VMEM block
    # spad_ref: (H + 2*padding, W + 2*padding) f32 VMEM scratch
    C_in = x_ref.shape[1]
    C_out = o_ref.shape[1]
    H = x_ref.shape[2]
    W = x_ref.shape[3]

    # 1) channel-sum: the Gabor bank is identical across input channels.
    s = x_ref[0, 0]
    for c in range(1, C_in):
        s = s + x_ref[0, c]

    # 2) zero-padded halo built in VMEM (no jnp.pad / extra HBM pass).
    spad_ref[...] = jnp.zeros_like(spad_ref)
    spad_ref[padding:padding + H, padding:padding + W] = s
    sp = spad_ref[...]

    # 3) K*K shifted windows (static slices), computed once and shared
    #    across all output channels.
    wins = []
    for kh in range(K):
        for kw in range(K):
            wins.append(jax.lax.slice(
                sp,
                (kh * dilation, kw * dilation),
                (kh * dilation + (H_out - 1) * stride + 1,
                 kw * dilation + (W_out - 1) * stride + 1),
                (stride, stride)))                # (H_out, W_out)

    # 4) per-output-channel scalar-weighted accumulation on the VPU (no MXU).
    for o in range(C_out):
        acc = wins[0] * w_ref[o, 0]
        for t in range(1, K * K):
            acc = acc + wins[t] * w_ref[o, t]
        o_ref[0, o] = acc.astype(o_ref.dtype)


def gabor_conv2d_pallas(x_nchw, w_okk, *, stride=1, padding=1, dilation=1):
    """Conv with a C_in-broadcast bank: out[n, o] = conv2d(sum_c x[n, c], w[o])."""
    N, C_in, H, W = x_nchw.shape
    C_out, K, _ = w_okk.shape
    H_out = (H + 2 * padding - dilation * (K - 1) - 1) // stride + 1
    W_out = (W + 2 * padding - dilation * (K - 1) - 1) // stride + 1
    Hp, Wp = H + 2 * padding, W + 2 * padding

    w_flat = w_okk.reshape(C_out, K * K).astype(jnp.float32)
    x_nchw = x_nchw.astype(jnp.float32)

    kernel = functools.partial(_gabor_conv_kernel, K=K, stride=stride,
                               padding=padding, dilation=dilation,
                               H_out=H_out, W_out=W_out)

    # NOTE: for large H/W add a spatial grid axis with a dilation*(K-1) halo per
    # tile so blocks stay VMEM-safe (esp. 64 MiB/TC on v7x); for whole-image-
    # per-step at these sizes grid=(N,) already fits comfortably.
    return pl.pallas_call(
        kernel,
        out_shape=jax.ShapeDtypeStruct((N, C_out, H_out, W_out), jnp.float32),
        grid_spec=pltpu.PrefetchScalarGridSpec(
            num_scalar_prefetch=1,                 # w_flat -> SMEM scalar taps
            grid=(N,),
            in_specs=[
                pl.BlockSpec((1, C_in, H, W), lambda n, w: (n, 0, 0, 0)),
            ],
            out_specs=pl.BlockSpec((1, C_out, H_out, W_out),
                                   lambda n, w: (n, 0, 0, 0)),
            scratch_shapes=[pltpu.VMEM((Hp, Wp), jnp.float32)],
        ),
        compiler_params=pltpu.CompilerParams(
            dimension_semantics=("parallel",),
            vmem_limit_bytes=32 * 1024 * 1024,
        ),
    )(w_flat, x_nchw)


# ---------------------------------------------------------------------------
# GaborFilter module (params + forward) — NCHW in, NCHW out, like PyTorch
# ---------------------------------------------------------------------------
class GaborFilter:
    def __init__(self, channel_in, kernel_size, stride=1, padding=1, dilation=1,
                 key=None):
        self.kernel_size = kernel_size
        self.channel_in = channel_in
        self.channel_out = channel_in
        self.stride = stride
        self.padding = padding
        self.dilation = dilation

        if key is None:
            key = jax.random.PRNGKey(0)
        k1, k2, k3, k4, k5 = jax.random.split(key, 5)
        C = self.channel_out
        # Deterministic synthetic init matching the PyTorch __init__ distributions.
        self.Lambda = jax.random.uniform(k1, (C,), jnp.float32)          # torch.rand
        self.theta = jax.random.normal(k2, (C,), jnp.float32) * 1.0      # randn
        self.psi = jax.random.normal(k3, (C,), jnp.float32) * 0.02       # randn*0.02
        self.sigma = jax.random.normal(k4, (C,), jnp.float32) * 1.0      # randn
        self.gamma = jax.random.normal(k5, (C,), jnp.float32) * 0.0      # randn*0.0

    def __call__(self, x_nchw):
        theta = jax.nn.sigmoid(self.theta) * math.pi * 2.0
        gamma = 1.0 + self.gamma * 0.5
        sigma = 0.1 + jax.nn.sigmoid(self.sigma) * 0.4
        Lambda = 0.001 + jax.nn.sigmoid(self.Lambda) * 0.999
        psi = self.psi

        # Depthwise (C_out, K, K) bank — mathematically identical to the full
        # (C_out, C_in, K, K) conv because the bank is broadcast across C_in.
        w_okk = gabor_depthwise_bank(self.kernel_size, self.channel_out,
                                     sigma, theta, Lambda, psi, gamma)

        return gabor_conv2d_pallas(x_nchw, w_okk, stride=self.stride,
                                   padding=self.padding, dilation=self.dilation)


if __name__ == "__main__":
    key = jax.random.PRNGKey(0)
    k_params, k_x = jax.random.split(key)

    # Small shapes consistent with the module: batch=2, channels=4, spatial=16.
    N, C, H, W = 2, 4, 16, 16
    x = jax.random.normal(k_x, (N, C, H, W), jnp.float32)

    mod = GaborFilter(channel_in=C, kernel_size=3, stride=1, padding=1,
                      dilation=1, key=k_params)
    out = jax.block_until_ready(mod(x))
    assert out.shape == (N, C, H, W), out.shape

    # Reference check against XLA's dense conv with the full (O,I,K,K) bank.
    theta = jax.nn.sigmoid(mod.theta) * math.pi * 2.0
    gamma = 1.0 + mod.gamma * 0.5
    sigma = 0.1 + jax.nn.sigmoid(mod.sigma) * 0.4
    Lambda = 0.001 + jax.nn.sigmoid(mod.Lambda) * 0.999
    kern = gabor_fn(3, C, C, sigma, theta, Lambda, mod.psi, gamma)
    ref = jax.lax.conv_general_dilated(
        x, kern, window_strides=(1, 1), padding=((1, 1), (1, 1)),
        dimension_numbers=("NCHW", "OIHW", "NCHW"))
    assert jnp.allclose(out, ref, atol=2e-4, rtol=2e-4), \
        float(jnp.max(jnp.abs(out - ref)))

    print("KERNEL_OK")
</pallas_src>

<mosaic_0001>
module attributes {stable_mosaic.version = 11 : i64} {
  func.func @_gabor_conv_kernel(%arg0: i32, %arg1: memref<4x9xf32, #tpu.memory_space<smem>>, %arg2: memref<1x4x16x16xf32, #tpu.memory_space<vmem>>, %arg3: memref<1x4x16x16xf32, #tpu.memory_space<vmem>>, %arg4: memref<18x18xf32, #tpu.memory_space<vmem>>) attributes {dimension_semantics = [#tpu.dimension_semantics<parallel>], iteration_bounds = array<i64: 2>, scalar_prefetch = 1 : i64, scratch_operands = 1 : i64, tpu.core_type = #tpu.core_type<tc>, window_params = [{transform_indices = @transform_0, window_bounds = array<i64: 1, 4, 16, 16>}, {transform_indices = @transform_1, window_bounds = array<i64: 1, 4, 16, 16>}]} {
    %c0 = arith.constant 0 : index
    %c0_0 = arith.constant 0 : index
    %c0_1 = arith.constant 0 : index
    %c0_2 = arith.constant 0 : index
    %0 = vector.load %arg2[%c0, %c0_0, %c0_1, %c0_2] : memref<1x4x16x16xf32, #tpu.memory_space<vmem>>, vector<1x1x16x16xf32>
    %1 = vector.shape_cast %0 : vector<1x1x16x16xf32> to vector<16x16xf32>
    %c0_3 = arith.constant 0 : index
    %c1 = arith.constant 1 : index
    %c0_4 = arith.constant 0 : index
    %c0_5 = arith.constant 0 : index
    %2 = vector.load %arg2[%c0_3, %c1, %c0_4, %c0_5] : memref<1x4x16x16xf32, #tpu.memory_space<vmem>>, vector<1x1x16x16xf32>
    %3 = vector.shape_cast %2 : vector<1x1x16x16xf32> to vector<16x16xf32>
    %4 = arith.addf %1, %3 : vector<16x16xf32>
    %c0_6 = arith.constant 0 : index
    %c2 = arith.constant 2 : index
    %c0_7 = arith.constant 0 : index
    %c0_8 = arith.constant 0 : index
    %5 = vector.load %arg2[%c0_6, %c2, %c0_7, %c0_8] : memref<1x4x16x16xf32, #tpu.memory_space<vmem>>, vector<1x1x16x16xf32>
    %6 = vector.shape_cast %5 : vector<1x1x16x16xf32> to vector<16x16xf32>
    %7 = arith.addf %4, %6 : vector<16x16xf32>
    %c0_9 = arith.constant 0 : index
    %c3 = arith.constant 3 : index
    %c0_10 = arith.constant 0 : index
    %c0_11 = arith.constant 0 : index
    %8 = vector.load %arg2[%c0_9, %c3, %c0_10, %c0_11] : memref<1x4x16x16xf32, #tpu.memory_space<vmem>>, vector<1x1x16x16xf32>
    %9 = vector.shape_cast %8 : vector<1x1x16x16xf32> to vector<16x16xf32>
    %10 = arith.addf %7, %9 : vector<16x16xf32>
    %cst = arith.constant 0.000000e+00 : f32
    %11 = vector.broadcast %cst : f32 to vector<18x18xf32>
    %c0_12 = arith.constant 0 : index
    %c0_13 = arith.constant 0 : index
    %12 = vector.load %arg4[%c0_12, %c0_13] : memref<18x18xf32, #tpu.memory_space<vmem>>, vector<18x18xf32>
    tpu.vector_store %arg4[%c0_12, %c0_13], %11 {strides = array<i32>} : memref<18x18xf32, #tpu.memory_space<vmem>>, vector<18x18xf32>,
    %c1_14 = arith.constant 1 : index
    %c1_15 = arith.constant 1 : index
    %13 = vector.load %arg4[%c1_14, %c1_15] : memref<18x18xf32, #tpu.memory_space<vmem>>, vector<16x16xf32>
    tpu.vector_store %arg4[%c1_14, %c1_15], %10 {strides = array<i32>} : memref<18x18xf32, #tpu.memory_space<vmem>>, vector<16x16xf32>,
    %c0_16 = arith.constant 0 : index
    %c0_17 = arith.constant 0 : index
    %14 = vector.load %arg4[%c0_16, %c0_17] : memref<18x18xf32, #tpu.memory_space<vmem>>, vector<18x18xf32>
    %15 = vector.extract_strided_slice %14 {offsets = [0, 0], sizes = [16, 16], strides = [1, 1]} : vector<18x18xf32> to vector<16x16xf32>
    %16 = vector.extract_strided_slice %14 {offsets = [0, 1], sizes = [16, 16], strides = [1, 1]} : vector<18x18xf32> to vector<16x16xf32>
    %17 = vector.extract_strided_slice %14 {offsets = [0, 2], sizes = [16, 16], strides = [1, 1]} : vector<18x18xf32> to vector<16x16xf32>
    %18 = vector.extract_strided_slice %14 {offsets = [1, 0], sizes = [16, 16], strides = [1, 1]} : vector<18x18xf32> to vector<16x16xf32>
    %19 = vector.extract_strided_slice %14 {offsets = [1, 1], sizes = [16, 16], strides = [1, 1]} : vector<18x18xf32> to vector<16x16xf32>
    %20 = vector.extract_strided_slice %14 {offsets = [1, 2], sizes = [16, 16], strides = [1, 1]} : vector<18x18xf32> to vector<16x16xf32>
    %21 = vector.extract_strided_slice %14 {offsets = [2, 0], sizes = [16, 16], strides = [1, 1]} : vector<18x18xf32> to vector<16x16xf32>
    %22 = vector.extract_strided_slice %14 {offsets = [2, 1], sizes = [16, 16], strides = [1, 1]} : vector<18x18xf32> to vector<16x16xf32>
    %23 = vector.extract_strided_slice %14 {offsets = [2, 2], sizes = [16, 16], strides = [1, 1]} : vector<18x18xf32> to vector<16x16xf32>
    %c0_18 = arith.constant 0 : index
    %c0_19 = arith.constant 0 : index
    %24 = memref.load %arg1[%c0_18, %c0_19] : memref<4x9xf32, #tpu.memory_space<smem>>
    %25 = vector.broadcast %24 : f32 to vector<16x16xf32>
    %26 = arith.mulf %15, %25 : vector<16x16xf32>
    %c0_20 = arith.constant 0 : index
    %c1_21 = arith.constant 1 : index
    %27 = memref.load %arg1[%c0_20, %c1_21] : memref<4x9xf32, #tpu.memory_space<smem>>
    %28 = vector.broadcast %27 : f32 to vector<16x16xf32>
    %29 = arith.mulf %16, %28 : vector<16x16xf32>
    %30 = arith.addf %26, %29 : vector<16x16xf32>
    %c0_22 = arith.constant 0 : index
    %c2_23 = arith.constant 2 : index
    %31 = memref.load %arg1[%c0_22, %c2_23] : memref<4x9xf32, #tpu.memory_space<smem>>
    %32 = vector.broadcast %31 : f32 to vector<16x16xf32>
    %33 = arith.mulf %17, %32 : vector<16x16xf32>
    %34 = arith.addf %30, %33 : vector<16x16xf32>
    %c0_24 = arith.constant 0 : index
    %c3_25 = arith.constant 3 : index
    %35 = memref.load %arg1[%c0_24, %c3_25] : memref<4x9xf32, #tpu.memory_space<smem>>
    %36 = vector.broadcast %35 : f32 to vector<16x16xf32>
    %37 = arith.mulf %18, %36 : vector<16x16xf32>
    %38 = arith.addf %34, %37 : vector<16x16xf32>
    %c0_26 = arith.constant 0 : index
    %c4 = arith.constant 4 : index
    %39 = memref.load %arg1[%c0_26, %c4] : memref<4x9xf32, #tpu.memory_space<smem>>
    %40 = vector.broadcast %39 : f32 to vector<16x16xf32>
    %41 = arith.mulf %19, %40 : vector<16x16xf32>
    %42 = arith.addf %38, %41 : vector<16x16xf32>
    %c0_27 = arith.constant 0 : index
    %c5 = arith.constant 5 : index
    %43 = memref.load %arg1[%c0_27, %c5] : memref<4x9xf32, #tpu.memory_space<smem>>
    %44 = vector.broadcast %43 : f32 to vector<16x16xf32>
    %45 = arith.mulf %20, %44 : vector<16x16xf32>
    %46 = arith.addf %42, %45 : vector<16x16xf32>
    %c0_28 = arith.constant 0 : index
    %c6 = arith.constant 6 : index
    %47 = memref.load %arg1[%c0_28, %c6] : memref<4x9xf32, #tpu.memory_space<smem>>
    %48 = vector.broadcast %47 : f32 to vector<16x16xf32>
    %49 = arith.mulf %21, %48 : vector<16x16xf32>
    %50 = arith.addf %46, %49 : vector<16x16xf32>
    %c0_29 = arith.constant 0 : index
    %c7 = arith.constant 7 : index
    %51 = memref.load %arg1[%c0_29, %c7] : memref<4x9xf32, #tpu.memory_space<smem>>
    %52 = vector.broadcast %51 : f32 to vector<16x16xf32>
    %53 = arith.mulf %22, %52 : vector<16x16xf32>
    %54 = arith.addf %50, %53 : vector<16x16xf32>
    %c0_30 = arith.constant 0 : index
    %c8 = arith.constant 8 : index
    %55 = memref.load %arg1[%c0_30, %c8] : memref<4x9xf32, #tpu.memory_space<smem>>
    %56 = vector.broadcast %55 : f32 to vector<16x16xf32>
    %57 = arith.mulf %23, %56 : vector<16x16xf32>
    %58 = arith.addf %54, %57 : vector<16x16xf32>
    %c0_31 = arith.constant 0 : index
    %c0_32 = arith.constant 0 : index
    %c0_33 = arith.constant 0 : index
    %c0_34 = arith.constant 0 : index
    %59 = vector.load %arg3[%c0_31, %c0_32, %c0_33, %c0_34] : memref<1x4x16x16xf32, #tpu.memory_space<vmem>>, vector<1x1x16x16xf32>
    %60 = vector.shape_cast %59 : vector<1x1x16x16xf32> to vector<16x16xf32>
    %61 = vector.shape_cast %58 : vector<16x16xf32> to vector<1x1x16x16xf32>
    tpu.vector_store %arg3[%c0_31, %c0_32, %c0_33, %c0_34], %61 {strides = array<i32>} : memref<1x4x16x16xf32, #tpu.memory_space<vmem>>, vector<1x1x16x16xf32>,
    %c1_35 = arith.constant 1 : index
    %c0_36 = arith.constant 0 : index
    %62 = memref.load %arg1[%c1_35, %c0_36] : memref<4x9xf32, #tpu.memory_space<smem>>
    %63 = vector.broadcast %62 : f32 to vector<16x16xf32>
    %64 = arith.mulf %15, %63 : vector<16x16xf32>
    %c1_37 = arith.constant 1 : index
    %c1_38 = arith.constant 1 : index
    %65 = memref.load %arg1[%c1_37, %c1_38] : memref<4x9xf32, #tpu.memory_space<smem>>
    %66 = vector.broadcast %65 : f32 to vector<16x16xf32>
    %67 = arith.mulf %16, %66 : vector<16x16xf32>
    %68 = arith.addf %64, %67 : vector<16x16xf32>
    %c1_39 = arith.constant 1 : index
    %c2_40 = arith.constant 2 : index
    %69 = memref.load %arg1[%c1_39, %c2_40] : memref<4x9xf32, #tpu.memory_space<smem>>
    %70 = vector.broadcast %69 : f32 to vector<16x16xf32>
    %71 = arith.mulf %17, %70 : vector<16x16xf32>
    %72 = arith.addf %68, %71 : vector<16x16xf32>
    %c1_41 = arith.constant 1 : index
    %c3_42 = arith.constant 3 : index
    %73 = memref.load %arg1[%c1_41, %c3_42] : memref<4x9xf32, #tpu.memory_space<smem>>
    %74 = vector.broadcast %73 : f32 to vector<16x16xf32>
    %75 = arith.mulf %18, %74 : vector<16x16xf32>
    %76 = arith.addf %72, %75 : vector<16x16xf32>
    %c1_43 = arith.constant 1 : index
    %c4_44 = arith.constant 4 : index
    %77 = memref.load %arg1[%c1_43, %c4_44] : memref<4x9xf32, #tpu.memory_space<smem>>
    %78 = vector.broadcast %77 : f32 to vector<16x16xf32>
    %79 = arith.mulf %19, %78 : vector<16x16xf32>
    %80 = arith.addf %76, %79 : vector<16x16xf32>
    %c1_45 = arith.constant 1 : index
    %c5_46 = arith.constant 5 : index
    %81 = memref.load %arg1[%c1_45, %c5_46] : memref<4x9xf32, #tpu.memory_space<smem>>
    %82 = vector.broadcast %81 : f32 to vector<16x16xf32>
    %83 = arith.mulf %20, %82 : vector<16x16xf32>
    %84 = arith.addf %80, %83 : vector<16x16xf32>
    %c1_47 = arith.constant 1 : index
    %c6_48 = arith.constant 6 : index
    %85 = memref.load %arg1[%c1_47, %c6_48] : memref<4x9xf32, #tpu.memory_space<smem>>
    %86 = vector.broadcast %85 : f32 to vector<16x16xf32>
    %87 = arith.mulf %21, %86 : vector<16x16xf32>
    %88 = arith.addf %84, %87 : vector<16x16xf32>
    %c1_49 = arith.constant 1 : index
    %c7_50 = arith.constant 7 : index
    %89 = memref.load %arg1[%c1_49, %c7_50] : memref<4x9xf32, #tpu.memory_space<smem>>
    %90 = vector.broadcast %89 : f32 to vector<16x16xf32>
    %91 = arith.mulf %22, %90 : vector<16x16xf32>
    %92 = arith.addf %88, %91 : vector<16x16xf32>
    %c1_51 = arith.constant 1 : index
    %c8_52 = arith.constant 8 : index
    %93 = memref.load %arg1[%c1_51, %c8_52] : memref<4x9xf32, #tpu.memory_space<smem>>
    %94 = vector.broadcast %93 : f32 to vector<16x16xf32>
    %95 = arith.mulf %23, %94 : vector<16x16xf32>
    %96 = arith.addf %92, %95 : vector<16x16xf32>
    %c0_53 = arith.constant 0 : index
    %c1_54 = arith.constant 1 : index
    %c0_55 = arith.constant 0 : index
    %c0_56 = arith.constant 0 : index
    %97 = vector.load %arg3[%c0_53, %c1_54, %c0_55, %c0_56] : memref<1x4x16x16xf32, #tpu.memory_space<vmem>>, vector<1x1x16x16xf32>
    %98 = vector.shape_cast %97 : vector<1x1x16x16xf32> to vector<16x16xf32>
    %99 = vector.shape_cast %96 : vector<16x16xf32> to vector<1x1x16x16xf32>
    tpu.vector_store %arg3[%c0_53, %c1_54, %c0_55, %c0_56], %99 {strides = array<i32>} : memref<1x4x16x16xf32, #tpu.memory_space<vmem>>, vector<1x1x16x16xf32>,
    %c2_57 = arith.constant 2 : index
    %c0_58 = arith.constant 0 : index
    %100 = memref.load %arg1[%c2_57, %c0_58] : memref<4x9xf32, #tpu.memory_space<smem>>
    %101 = vector.broadcast %100 : f32 to vector<16x16xf32>
    %102 = arith.mulf %15, %101 : vector<16x16xf32>
    %c2_59 = arith.constant 2 : index
    %c1_60 = arith.constant 1 : index
    %103 = memref.load %arg1[%c2_59, %c1_60] : memref<4x9xf32, #tpu.memory_space<smem>>
    %104 = vector.broadcast %103 : f32 to vector<16x16xf32>
    %105 = arith.mulf %16, %104 : vector<16x16xf32>
    %106 = arith.addf %102, %105 : vector<16x16xf32>
    %c2_61 = arith.constant 2 : index
    %c2_62 = arith.constant 2 : index
    %107 = memref.load %arg1[%c2_61, %c2_62] : memref<4x9xf32, #tpu.memory_space<smem>>
    %108 = vector.broadcast %107 : f32 to vector<16x16xf32>
    %109 = arith.mulf %17, %108 : vector<16x16xf32>
    %110 = arith.addf %106, %109 : vector<16x16xf32>
    %c2_63 = arith.constant 2 : index
    %c3_64 = arith.constant 3 : index
    %111 = memref.load %arg1[%c2_63, %c3_64] : memref<4x9xf32, #tpu.memory_space<smem>>
    %112 = vector.broadcast %111 : f32 to vector<16x16xf32>
    %113 = arith.mulf %18, %112 : vector<16x16xf32>
    %114 = arith.addf %110, %113 : vector<16x16xf32>
    %c2_65 = arith.constant 2 : index
    %c4_66 = arith.constant 4 : index
    %115 = memref.load %arg1[%c2_65, %c4_66] : memref<4x9xf32, #tpu.memory_space<smem>>
    %116 = vector.broadcast %115 : f32 to vector<16x16xf32>
    %117 = arith.mulf %19, %116 : vector<16x16xf32>
    %118 = arith.addf %114, %117 : vector<16x16xf32>
    %c2_67 = arith.constant 2 : index
    %c5_68 = arith.constant 5 : index
    %119 = memref.load %arg1[%c2_67, %c5_68] : memref<4x9xf32, #tpu.memory_space<smem>>
    %120 = vector.broadcast %119 : f32 to vector<16x16xf32>
    %121 = arith.mulf %20, %120 : vector<16x16xf32>
    %122 = arith.addf %118, %121 : vector<16x16xf32>
    %c2_69 = arith.constant 2 : index
    %c6_70 = arith.constant 6 : index
    %123 = memref.load %arg1[%c2_69, %c6_70] : memref<4x9xf32, #tpu.memory_space<smem>>
    %124 = vector.broadcast %123 : f32 to vector<16x16xf32>
    %125 = arith.mulf %21, %124 : vector<16x16xf32>
    %126 = arith.addf %122, %125 : vector<16x16xf32>
    %c2_71 = arith.constant 2 : index
    %c7_72 = arith.constant 7 : index
    %127 = memref.load %arg1[%c2_71, %c7_72] : memref<4x9xf32, #tpu.memory_space<smem>>
    %128 = vector.broadcast %127 : f32 to vector<16x16xf32>
    %129 = arith.mulf %22, %128 : vector<16x16xf32>
    %130 = arith.addf %126, %129 : vector<16x16xf32>
    %c2_73 = arith.constant 2 : index
    %c8_74 = arith.constant 8 : index
    %131 = memref.load %arg1[%c2_73, %c8_74] : memref<4x9xf32, #tpu.memory_space<smem>>
    %132 = vector.broadcast %131 : f32 to vector<16x16xf32>
    %133 = arith.mulf %23, %132 : vector<16x16xf32>
    %134 = arith.addf %130, %133 : vector<16x16xf32>
    %c0_75 = arith.constant 0 : index
    %c2_76 = arith.constant 2 : index
    %c0_77 = arith.constant 0 : index
    %c0_78 = arith.constant 0 : index
    %135 = vector.load %arg3[%c0_75, %c2_76, %c0_77, %c0_78] : memref<1x4x16x16xf32, #tpu.memory_space<vmem>>, vector<1x1x16x16xf32>
    %136 = vector.shape_cast %135 : vector<1x1x16x16xf32> to vector<16x16xf32>
    %137 = vector.shape_cast %134 : vector<16x16xf32> to vector<1x1x16x16xf32>
    tpu.vector_store %arg3[%c0_75, %c2_76, %c0_77, %c0_78], %137 {strides = array<i32>} : memref<1x4x16x16xf32, #tpu.memory_space<vmem>>, vector<1x1x16x16xf32>,
    %c3_79 = arith.constant 3 : index
    %c0_80 = arith.constant 0 : index
    %138 = memref.load %arg1[%c3_79, %c0_80] : memref<4x9xf32, #tpu.memory_space<smem>>
    %139 = vector.broadcast %138 : f32 to vector<16x16xf32>
    %140 = arith.mulf %15, %139 : vector<16x16xf32>
    %c3_81 = arith.constant 3 : index
    %c1_82 = arith.constant 1 : index
    %141 = memref.load %arg1[%c3_81, %c1_82] : memref<4x9xf32, #tpu.memory_space<smem>>
    %142 = vector.broadcast %141 : f32 to vector<16x16xf32>
    %143 = arith.mulf %16, %142 : vector<16x16xf32>
    %144 = arith.addf %140, %143 : vector<16x16xf32>
    %c3_83 = arith.constant 3 : index
    %c2_84 = arith.constant 2 : index
    %145 = memref.load %arg1[%c3_83, %c2_84] : memref<4x9xf32, #tpu.memory_space<smem>>
    %146 = vector.broadcast %145 : f32 to vector<16x16xf32>
    %147 = arith.mulf %17, %146 : vector<16x16xf32>
    %148 = arith.addf %144, %147 : vector<16x16xf32>
    %c3_85 = arith.constant 3 : index
    %c3_86 = arith.constant 3 : index
    %149 = memref.load %arg1[%c3_85, %c3_86] : memref<4x9xf32, #tpu.memory_space<smem>>
    %150 = vector.broadcast %149 : f32 to vector<16x16xf32>
    %151 = arith.mulf %18, %150 : vector<16x16xf32>
    %152 = arith.addf %148, %151 : vector<16x16xf32>
    %c3_87 = arith.constant 3 : index
    %c4_88 = arith.constant 4 : index
    %153 = memref.load %arg1[%c3_87, %c4_88] : memref<4x9xf32, #tpu.memory_space<smem>>
    %154 = vector.broadcast %153 : f32 to vector<16x16xf32>
    %155 = arith.mulf %19, %154 : vector<16x16xf32>
    %156 = arith.addf %152, %155 : vector<16x16xf32>
    %c3_89 = arith.constant 3 : index
    %c5_90 = arith.constant 5 : index
    %157 = memref.load %arg1[%c3_89, %c5_90] : memref<4x9xf32, #tpu.memory_space<smem>>
    %158 = vector.broadcast %157 : f32 to vector<16x16xf32>
    %159 = arith.mulf %20, %158 : vector<16x16xf32>
    %160 = arith.addf %156, %159 : vector<16x16xf32>
    %c3_91 = arith.constant 3 : index
    %c6_92 = arith.constant 6 : index
    %161 = memref.load %arg1[%c3_91, %c6_92] : memref<4x9xf32, #tpu.memory_space<smem>>
    %162 = vector.broadcast %161 : f32 to vector<16x16xf32>
    %163 = arith.mulf %21, %162 : vector<16x16xf32>
    %164 = arith.addf %160, %163 : vector<16x16xf32>
    %c3_93 = arith.constant 3 : index
    %c7_94 = arith.constant 7 : index
    %165 = memref.load %arg1[%c3_93, %c7_94] : memref<4x9xf32, #tpu.memory_space<smem>>
    %166 = vector.broadcast %165 : f32 to vector<16x16xf32>
    %167 = arith.mulf %22, %166 : vector<16x16xf32>
    %168 = arith.addf %164, %167 : vector<16x16xf32>
    %c3_95 = arith.constant 3 : index
    %c8_96 = arith.constant 8 : index
    %169 = memref.load %arg1[%c3_95, %c8_96] : memref<4x9xf32, #tpu.memory_space<smem>>
    %170 = vector.broadcast %169 : f32 to vector<16x16xf32>
    %171 = arith.mulf %23, %170 : vector<16x16xf32>
    %172 = arith.addf %168, %171 : vector<16x16xf32>
    %c0_97 = arith.constant 0 : index
    %c3_98 = arith.constant 3 : index
    %c0_99 = arith.constant 0 : index
    %c0_100 = arith.constant 0 : index
    %173 = vector.load %arg3[%c0_97, %c3_98, %c0_99, %c0_100] : memref<1x4x16x16xf32, #tpu.memory_space<vmem>>, vector<1x1x16x16xf32>
    %174 = vector.shape_cast %173 : vector<1x1x16x16xf32> to vector<16x16xf32>
    %175 = vector.shape_cast %172 : vector<16x16xf32> to vector<1x1x16x16xf32>
    tpu.vector_store %arg3[%c0_97, %c3_98, %c0_99, %c0_100], %175 {strides = array<i32>} : memref<1x4x16x16xf32, #tpu.memory_space<vmem>>, vector<1x1x16x16xf32>,
    return
  }
  func.func @transform_0(%arg0: i32, %arg1: memref<4x9xf32, #tpu.memory_space<smem>>) -> (i32, i32, i32, i32) {
    %c0_i32 = arith.constant 0 : i32
    %c0_i32_0 = arith.constant 0 : i32
    %c0_i32_1 = arith.constant 0 : i32
    %c0_i32_2 = arith.constant 0 : i32
    return %arg0, %c0_i32, %c0_i32_0, %c0_i32_1 : i32, i32, i32, i32
  }
  func.func @transform_1(%arg0: i32, %arg1: memref<4x9xf32, #tpu.memory_space<smem>>) -> (i32, i32, i32, i32) {
    %c0_i32 = arith.constant 0 : i32
    %c0_i32_0 = arith.constant 0 : i32
    %c0_i32_1 = arith.constant 0 : i32
    %c0_i32_2 = arith.constant 0 : i32
    return %arg0, %c0_i32, %c0_i32_0, %c0_i32_1 : i32, i32, i32, i32
  }
}

</mosaic_0001>

<bundles_post_ra>
// kernel: tpu_custom_call.1
= control target key start
LH: loop header
LB: loop body
LE: loop exit
PB: predicated region body
PF: predicated region fallthrough
CT: control target
= control target key end

     0   :  { %s1898_s0 = inlined_call_operand.hbm [shape: f32[4,9], index: 0, kind: input, shape index: {}]   ;;  %s1899_s1 = inlined_call_operand.hbm [shape: f32[2,4,16,16], index: 1, kind: input, shape index: {}]   ;;  %s1900_s2 = inlined_call_operand.hbm [shape: f32[2,4,16,16], index: 2, kind: output, shape index: {}]  }
   0x1   :  { %1917 = sst [smem:[#allocation19_spill]] %s1899_s1  ;;  %s995_s11 = scalar_lea.hbm %s1898_s0, 64 }
   0x2   :  { %p996_p0 = scmp.ne.s32.totalorder %s1898_s0, %s995_s11  ;;  %p999_p1 = scmp.lt.u32.totalorder %s995_s11, %s1898_s0 }
   0x4   :  { %p1001_p2 = pnand %p999_p1, %p996_p0 }
   0x6   :  { %1004 = shalt.err (!%p1001_p2)  }
   0x7   :  { %s1105_s16 = smov [#allocation4]  }
   0x8   :  { %8 = dma.hbm_to_smem %s1898_s0, 64, %s1105_s16, [#allocation3] }
   0x9   :  { %1079 = dma.done.wait [#allocation3], 64 }
   0xa   :  { %1080 = vsyncadd [#allocation3], 4294967232 }
   0xb   :  { %10 = sfence }
   0xc   :  { %11 = vsyncpa [#allocation6], 0 }
   0xd   :  { %13 = vsyncpa [#allocation6 + $0x1], 0 }
   0xe   :  { %14 = vsyncpa [#allocation7], 0 }
   0xf   :  { %16 = vsyncpa [#allocation7 + $0x1], 0  ;;  %s1143_s19 = smov 0   ;;  %s1145_s20 = smov 0  }
  0x10   :  { %s1147_s21 = smov 0   ;;  %s1149_s22 = smov 0  }
  0x11 LB: > { %1918 = sst [smem:[#allocation12_spill]] %s1091_s19  ;;  %s1164_s0 = sadd.s32 4294967295, %s1103_s22   ;;  %s1103_s22 = sphi %s1149_s22, %s1943_s22   ;;  %s1099_s21 = sphi %s1147_s21, %s1946_s21   ;;  %s1095_s20 = sphi %s1145_s20, %s1945_s20   ;;  %s1091_s19 = sphi %s1143_s19, %s1944_s19  }
  0x12   : > { %1919 = sst [smem:[#allocation13_spill]] %s1095_s20  ;;  %s877_s23 = sadd.s32 4294967294, %s1103_s22  }
  0x13   : > { %1920 = sst [smem:[#allocation14_spill]] %s1099_s21  ;;  %s1168_s24 = sadd.s32 1, %s1103_s22  }
  0x14   : > { %1921 = sst [smem:[#allocation15_spill]] %s1103_s22  ;;  %s29_s25 = sadd.s32 1, %s1099_s21 }
  0x15   : > { %1922 = sst [smem:[#allocation16_spill]] %s1168_s24  ;;  %s26_s26 = ssub.s32 %s1103_s22, %s1168_s24 }
  0x16   : > { %p36_p3 = scmp.ne.s32.totalorder %s1099_s21, %s1095_s20  ;;  %p27_p4 = scmp.eq.s32.totalorder %s26_s26, 0 }
  0x17   : > { %p37_p5 = scmp.eq.s32.totalorder %s1103_s22, 0  ;;  %p42_p6 = scmp.ne.s32.totalorder %s1095_s20, %s1091_s19 }
  0x18   : > { %p43_p7 = scmp.eq.s32.totalorder %s1164_s0, 0  ;;  %p66_p10 = scmp.eq.s32.totalorder %s1164_s0, 1 }
  0x19   : > { %s1180_s27 = scalar_select %p27_p4, %s1099_s21, %s29_s25  }
  0x1a   : > { %p1182_p8 = por %p37_p5, %p36_p3  ;;  %p1186_p9 = por %p43_p7, %p42_p6 }
  0x1b   : > { %1923 = sst [smem:[#allocation17_spill]] %s1180_s27  ;;  %p72_p11 = scmp.eq.s32.totalorder %s877_s23, 1 }
  0x1c   : > { %p952_p13 = scmp.lt.s32.totalorder %s1103_s22, 2  ;;  %p1193_p0 = por %p66_p10, %p36_p3 }
  0x1d   : > { %p1197_p1 = por %p72_p11, %p42_p6  ;;  %s92_s4 = sand.u32 1, %s1099_s21  }
  0x1e   : > { %s1926_s30 = scalar_select %p1193_p0, 1, 0 }
  0x1f   : > { %s1927_s3 = scalar_select %p1197_p1, 1, 0 }
  0x20   : > { %s938_s5 = sshll.u32 %s1103_s22, 10  ;;  %s880_s6 = sshll.u32 %s92_s4, 6 }
  0x21   : > { %1928 = sst [smem:[#allocation18_spill]] %s1927_s3  ;;  %s1929_s1 = sld [smem:[#allocation19_spill]] }
  0x22   : > { %s96_s10 = scalar_lea.vmem [#allocation5], %s880_s6  ;;  %p1210_p2 = pnand %p952_p13, %p1182_p8 }
  0x23   : > { %s103_s11 = sshll.u32 %s96_s10, 4  ;;  %s1216_s13 = scalar_lea.sflag [#allocation6], %s92_s4  ;;  %s1214_s11 = int_to_ptr.vmem [resolvable:$true] %s103_s11 }
  0x24   : > { %p1007_p4 = pneg %p1210_p2 }
  0x27   : > { %s1206_s9 = scalar_lea.hbm %s1929_s1, %s938_s5  ;;  %s1010_s17 = scalar_lea.hbm %s1929_s1, 2048 }
  0x28   : > { %s1005_s14 = scalar_lea.hbm %s1206_s9, 1024  ;;  %p1011_p7 = scmp.lt.u32.totalorder %s1206_s9, %s1929_s1 }
  0x29   : > { %p1006_p3 = scmp.ne.s32.totalorder %s1206_s9, %s1005_s14  ;;  %p1012_p8 = scmp.lt.u32.totalorder %s1010_s17, %s1005_s14 }
  0x2a   : > { %p1014_p11 = scmp.lt.u32.totalorder %s1005_s14, %s1206_s9 }
  0x2b   : > { %p1008_p5 = pnand %p1007_p4, %p1006_p3  ;;  %p1013_p10 = por %p1012_p8, %p1011_p7 }
  0x2d   : > { %p1009_p6 = pneg %p1008_p5  ;;  %p1015_p13 = por %p1014_p11, %p1013_p10 }
  0x2f   : > { %p1016_p12 = pnand %p1015_p13, %p1009_p6 }
  0x31   : > { %1019 = shalt.err (!%p1016_p12)
}
  0x32   : > { %s1020_s25 = scalar_lea.vmem %s1214_s11, 1024  ;;  %s1106_s26 = smov [#allocation5]  }
  0x33   : > { %p1021_p3 = scmp.ne.s32.totalorder %s1214_s11, %s1020_s25  ;;  %s1025_s28 = sshll.u32 %s1106_s26, 4  ;;  %s1026_s28 = int_to_ptr.vmem [resolvable:$false] %s1025_s28 }
  0x34   : > { %s1027_s4 = scalar_lea.vmem %s1026_s28, 2048  ;;  %p1028_p0 = scmp.lt.s32.totalorder %s1214_s11, %s1026_s28 }
  0x35   : > { %p1023_p5 = pnand %p1021_p3, %p1007_p4  ;;  %p1029_p7 = scmp.lt.s32.totalorder %s1027_s4, %s1020_s25 }
  0x37   : > { %p1024_p1 = pneg %p1023_p5  ;;  %p1030_p8 = por %p1029_p7, %p1028_p0 }
  0x39   : > { %p1031_p10 = pnand %p1030_p8, %p1024_p1 }
  0x3b   : > { %1034 = shalt.err (!%p1031_p10)
}
  0x3c   : > { %s1107_s5 = smov 128   ;;  %s1108_s6 = smov 8  }
  0x3d   : > { %947 = dma.hbm_to_vmem [thread:$0]  (!%p1210_p2), %s1206_s9, 1024, %s1214_s11, %s1216_s13, %s1107_s5, %s1107_s5, %s1108_s6  }
  0x3e   : > { %p883_p12 = scmp.ge.s32.totalorder %s1103_s22, 1  ;;  %p111_p4 = scmp.lt.s32.totalorder %s1103_s22, 3 }
  0x40   : > { %p112_p6 = pnand %p883_p12, %p111_p4 }
  0x41   : > { %s1247_s7 = sand.u32 (!%p112_p6), 1, %s1095_s20  }
  0x42   : > { %115 = sbr.rel (%p112_p6) target bundleno = 434 (0x1b2), region = 24  ;;  %s1902_s8 = sshll.u32 (!%p112_p6), %s1247_s7, 6 }
  0x43   : > { %s118_s10 = scalar_lea.sflag (!%p112_p6), [#allocation6], %s1247_s7  ;;  %s121_s14 = scalar_lea.vmem (!%p112_p6), [#allocation5], %s1902_s8 }
  0x49   : > { %1082 = dma.done.wait (%p1186_p9), %s118_s10, 1024  }
  0x4a   : > { %1084 = vsyncadd (%p1186_p9), %s118_s10, 4294966272  ;;  %vm157_vm0 = vcmask 146432   ;;  %v1109_v0 = vmov 0.0   ;;  %vm160_vm1 = vcmask 140288   ;;  %v140_v1 = vld [vmem:[%s121_s14] sm:$0xff]  ;;  %v886_v2 = vld [vmem:[%s121_s14 + $0x10] sm:$0xff] }
  0x4b   : > { %158 = vst.msk [vmem:[#allocation2] sm:$0xff] %vm157_vm0, %v1109_v0  ;;  %159 = vst.msk [vmem:[#allocation2 + $0x8] sm:$0xff] %vm157_vm0, %v1109_v0  ;;  %v888_v3 = vld [vmem:[%s121_s14 + $0x20] sm:$0xff]  ;;  %v145_v4 = vadd.f32 %v886_v2, %v140_v1  ;;  %v141_v5 = vld [vmem:[%s121_s14 + $0x8] sm:$0xff]  ;;  %s1110_s29 = smov 1   ;;  %vm170_vm2 = vcmask 138248  }
  0x4c   : > { %161 = vst.msk [vmem:[#allocation2 + $0x10] sm:$0x3] %vm160_vm1, %v1109_v0  ;;  %v887_v6 = vld [vmem:[%s121_s14 + $0x18] sm:$0xff]  ;;  %v890_v7 = vld [vmem:[%s121_s14 + $0x30] sm:$0xff]  ;;  %v889_v9 = vld [vmem:[%s121_s14 + $0x28] sm:$0xff]  ;;  %s1257_s9 = sld [smem:[#allocation4 + $0x2]] }
  0x4d   : > { %v146_v8 = vadd.f32 %v887_v6, %v141_v5  ;;  %v150_v10 = vadd.f32 %v888_v3, %v145_v4  ;;  %v891_v12 = vld [vmem:[%s121_s14 + $0x38] sm:$0xff]  ;;  %s1259_s11 = sld [smem:[#allocation4 + $0x1]]  ;;  %s1267_s16 = sld [smem:[#allocation4 + $0x82]]  ;;  %vm216_vm3 = vcmask 1046528   ;;  %vm276_vm4 = vcmask 1045504  }
  0x4e   : > { %s1261_s12 = sld [smem:[#allocation4 + $0x81]]  ;;  %s1269_s17 = sld [smem:[#allocation4 + $0x102]]  ;;  %vm328_vm5 = vcmask 130048  }
  0x4f   : > { %v151_v11 = vadd.f32 %v889_v9, %v146_v8  ;;  %v155_v13 = vadd.f32 %v890_v7, %v150_v10  ;;  %s1263_s13 = sld [smem:[#allocation4 + $0x101]]  ;;  %s1273_s18 = sld [smem:[#allocation4 + $0x182]] }
  0x50   : > { %s1265_s15 = sld [smem:[#allocation4 + $0x181]]  ;;  %s1275_s23 = sld [smem:[#allocation4 + $0x4]] }
  0x51   : > { %164 = vrot.lane.b32.xlu0 %v155_v13, %s1110_s29  ;;  %v156_v14 = vadd.f32 %v891_v12, %v151_v11  ;;  %s1277_s25 = sld [smem:[#allocation4 + $0x5]]  ;;  %s1279_s26 = sld [smem:[#allocation4 + $0x7]] }
  0x52   : > { %v195_v17 = vstv %s1257_s9  ;;  %s1285_s28 = sld [smem:[#allocation4 + $0x8]]  ;;  %s1287_s4 = sld [smem:[#allocation4 + $0x84]] }
  0x53   : > { %v181_v18 = vstv %s1259_s11  ;;  %s1289_s5 = sld [smem:[#allocation4 + $0x104]]  ;;  %s1903_s10 = smov 126   ;;  %v350_v30 = vstv %s1267_s16 }
  0x54   : > { %s1291_s6 = sld [smem:[#allocation4 + $0x184]]  ;;  %s1905_s14 = smov 127   ;;  %v336_v23 = vstv %s1261_s12  ;;  %v503_v31 = vstv %s1269_s17 }
  0x55   : > { %166 = vrot.lane.b32.xlu0 %v156_v14, %s1110_s29  ;;  %s1295_s29 = sld [smem:[#allocation4 + $0x85]]  ;;  %s1302_s11 = sld [smem:[#allocation4 + $0x107]]  ;;  %v489_v26 = vstv %s1263_s13  ;;  %v656_v32 = vstv %s1273_s18 }
  0x56   : > { %s1297_s9 = sld [smem:[#allocation4 + $0x105]]  ;;  %s1304_s8 = sld [smem:[#allocation4 + $0x187]]  ;;  %v642_v29 = vstv %s1265_s15  ;;  %v227_v33 = vstv %s1275_s23 }
  0x57   : > { %s1312_s1 = sld [smem:[#allocation4 + $0x188]]  ;;  %s1314_s12 = sld [smem:[#allocation4 + $0x3]]  ;;  %v248_v34 = vstv %s1277_s25  ;;  %v1342_v35 = vstv %s1279_s26 }
  0x58   : > { %s1931_s27 = smov 127   ;;  %s1318_s21 = sld [smem:[#allocation4 + $0x6]]  ;;  %v1347_v36 = vstv %s1285_s28  ;;  %v381_v37 = vstv %s1287_s4 }
  0x59   : > { %s1320_s20 = sld [smem:[#allocation4 + $0x83]]  ;;  %s1330_s3 = sld [smem:[#allocation4 + $0x86]]  ;;  %v1351_v38 = vstv %s1289_s5 }
  0x5a   : > { %s1323_s24 = sld [smem:[#allocation4 + $0x103]]  ;;  %s1336_s13 = sld [smem:[#allocation4 + $0x106]]  ;;  %v1354_v39 = vstv %s1291_s6 }
  0x5b   : > { %s1325_s22 = sld [smem:[#allocation4 + $0x183]]  ;;  %s1932_s19 = smov 126   ;;  %v1359_v42 = vstv %s1295_s29  ;;  %v1365_v44 = vstv %s1302_s11 }
  0x5c   : > { %s1344_s15 = sld [smem:[#allocation4 + $0x186]]  ;;  %v1362_v43 = vstv %s1297_s9  ;;  %v1368_v45 = vstv %s1304_s8  ;;  %s939_s8 = sshll.u32 %s1164_s0, 10 }
  0x5d   : > { %v1379_v48 = vstv %s1312_s1  ;;  %v1382_v49 = vstv %s1314_s12  ;;  %s1651_s1 = sld [smem:[#allocation4 + $0x185]]  ;;  %s1850_s23 = scalar_lea.hbm %s1900_s2, %s939_s8 }
  0x5e   : > { %v1385_v50 = vstv %s1318_s21  ;;  %s176_s21 = sld [smem:[#allocation4]]  ;;  %s791_s25 = scalar_lea.sflag [#allocation7], %s1247_s7 }
  0x5f   : > { %v1388_v51 = vstv %s1320_s20  ;;  %v1400_v57 = vstv %s1330_s3  ;;  %s1684_s20 = sld [smem:[#allocation4 + $0x87]]  ;;  %p1937_p0 = scmp.ne.s32.totalorder %s1926_s30, 0 }
  0x60   : > { %v1391_v52 = vstv %s1323_s24  ;;  %v1412_v62 = vstv %s1336_s13  ;;  %s1796_s24 = sld [smem:[#allocation4 + $0x100]]  ;;  %s1113_s26 = smov [#allocation8]  }
  0x61   : > { %v1394_v53 = vstv %s1325_s22  ;;  %s1794_s22 = sld [smem:[#allocation4 + $0x80]]  ;;  %s1039_s28 = sshll.u32 %s1113_s26, 4  ;;  %s1040_s28 = int_to_ptr.vmem [resolvable:$false] %s1039_s28 }
  0x62   : > { %v1420_v2 = vstv %s1344_s15  ;;  %s1041_s4 = scalar_lea.vmem %s1040_s28, 2048 }
  0xc3   : > { %v165_v15 = vpop.permute.xlu0 %164 }
  0xc4   : > { %171 = vst.msk [vmem:[#allocation2 + $0x1] sm:$0xff] %vm170_vm2, %v165_v15 }
  0xc7   : > { %v167_v16 = vpop.permute.xlu0 %166 }
  0xc8   : > { %172 = vst.msk [vmem:[#allocation2 + $0x9] sm:$0xff] %vm170_vm2, %v167_v16 }
  0xcb   : > { %v1281_v19 = vld [vmem:[#allocation2] sm:$0xff] }
  0xcc   : > { %v196_v20 = vmul.f32 %v195_v17, %v1281_v19  ;;  %v182_v21 = vmul.f32 %v181_v18, %v1281_v19  ;;  %v337_v41 = vmul.f32 %v336_v23, %v1281_v19  ;;  %v490_v55 = vmul.f32 %v489_v26, %v1281_v19 }
  0xcd   : > { %v228_v56 = vmul.f32 %v227_v33, %v1281_v19  ;;  %v643_v59 = vmul.f32 %v642_v29, %v1281_v19  ;;  %v351_v63 = vmul.f32 %v350_v30, %v1281_v19  ;;  %v504_v0 = vmul.f32 %v503_v31, %v1281_v19 }
  0xce   : > { %200 = vrot.lane.b32.xlu0 %v196_v20, %s1903_s10  ;;  %186 = vrot.lane.b32.xlu1 %v182_v21, %s1905_s14  ;;  %s1308_s10 = sld [smem:[#allocation4 + $0x88]]  ;;  %v249_v1 = vmul.f32 %v248_v34, %v1281_v19  ;;  %v1423_v3 = vmul.f32 %v656_v32, %v1281_v19  ;;  %v1427_v4 = vmul.f32 %v1342_v35, %v1281_v19 }
  0xcf   : > { %v1299_v22 = vld [vmem:[#allocation2 + $0x8] sm:$0xff]  ;;  %s1310_s14 = sld [smem:[#allocation4 + $0x108]]  ;;  %v1402_v58 = vld [vmem:[#allocation2 + $0x10] sm:$0x3]  ;;  %v1435_v6 = vmul.f32 %v1347_v36, %v1281_v19  ;;  %v234_v8 = vrot.slane %v228_v56, 1  ;;  %v1448_v13 = vmul.f32 %v381_v37, %v1281_v19  ;;  %v1452_v14 = vmul.f32 %v1351_v38, %v1281_v19 }
  0xd0   : > { %v183_v24 = vmul.f32 %v181_v18, %v1299_v22  ;;  %v338_v25 = vmul.f32 %v336_v23, %v1299_v22  ;;  %v491_v27 = vmul.f32 %v489_v26, %v1299_v22  ;;  %v197_v28 = vmul.f32 %v195_v17, %v1299_v22 }
  0xd1   : > { %v644_v40 = vmul.f32 %v642_v29, %v1299_v22  ;;  %v352_v54 = vmul.f32 %v350_v30, %v1299_v22  ;;  %v1406_v60 = vmul.f32 %v227_v33, %v1299_v22  ;;  %v1409_v61 = vmul.f32 %v248_v34, %v1299_v22 }
  0xd2   : > { %343 = vrot.lane.b32.xlu0 %v338_v25, %s1931_s27  ;;  %188 = vrot.lane.b32.xlu1 %v183_v24, %s1931_s27  ;;  %v1431_v5 = vmul.f32 %v1342_v35, %v1299_v22  ;;  %v505_v7 = vmul.f32 %v503_v31, %v1299_v22  ;;  %v1439_v9 = vmul.f32 %v227_v33, %v1402_v58  ;;  %v255_v16 = vrot.slane %v249_v1, 1 }
  0xd3   : > { %v1443_v10 = vmul.f32 %v1347_v36, %v1299_v22  ;;  %v235_v11 = vrot.slane %v1406_v60, 1  ;;  %v256_v12 = vrot.slane %v1409_v61, 1  ;;  %v658_v15 = vmul.f32 %v656_v32, %v1299_v22 }
  0xd4   : > { %v1371_v46 = vstv %s1308_s10  ;;  %v251_v17 = vmul.f32 %v248_v34, %v1402_v58  ;;  %v1459_v18 = vmul.f32 %v381_v37, %v1299_v22  ;;  %v294_v20 = vrot.slane %v1427_v4, 2 }
  0xd5   : > { %v1374_v47 = vstv %s1310_s14  ;;  %v295_v21 = vrot.slane %v1431_v5, 2  ;;  %v315_v23 = vrot.slane %v1435_v6, 2  ;;  %v384_v24 = vmul.f32 %v381_v37, %v1402_v58 }
  0xd6   : > { %496 = vrot.lane.b32.xlu0 %v491_v27, %s1931_s27  ;;  %202 = vrot.lane.b32.xlu1 %v197_v28, %s1932_s19  ;;  %v237_v25 = vrot.slane %v1439_v9, 1  ;;  %v316_v26 = vrot.slane %v1443_v10, 2  ;;  %v290_v27 = vmul.f32 %v1342_v35, %v1402_v58  ;;  %v1471_v28 = vmul.f32 %v1365_v44, %v1299_v22 }
  0xd7   : > { %v236_v29 = vsel %vm216_vm3, %v234_v8, %v235_v11  ;;  %v257_v30 = vsel %vm216_vm3, %v255_v16, %v256_v12  ;;  %v1481_v31 = vmul.f32 %v1368_v45, %v1299_v22  ;;  %v594_v32 = vmul.f32 %v1365_v44, %v1281_v19 }
  0xd8   : > { %v258_v33 = vrot.slane %v251_v17, 1  ;;  %v389_v34 = vrot.slane %v1459_v18, 1  ;;  %v536_v35 = vmul.f32 %v1351_v38, %v1299_v22  ;;  %v601_v37 = vrot.slane %v1471_v28, 2 }
  0xd9   : > { %v297_v56 = vrot.slane %v290_v27, 2  ;;  %v1503_v1 = vmul.f32 %v1371_v46, %v1299_v22  ;;  %v754_v4 = vrot.slane %v1481_v31, 2  ;;  %v747_v5 = vmul.f32 %v1368_v45, %v1281_v19 }
  0xda   : > { %649 = vrot.lane.b32.xlu0 %v644_v40, %s1931_s27  ;;  %341 = vrot.lane.b32.xlu1 %v337_v41, %s1931_s27  ;;  %v391_v40 = vrot.slane %v384_v24, 1  ;;  %v537_v41 = vmul.f32 %v1351_v38, %v1402_v58  ;;  %v615_v6 = vmul.f32 %v1374_v47, %v1281_v19  ;;  %v768_v18 = vmul.f32 %v1379_v48, %v1281_v19 }
  0xdb   : > { %v1916_v9 = vrot.slane %v1503_v1, 2  ;;  %v753_v17 = vrot.slane %v747_v5, 2  ;;  %v1526_v24 = vmul.f32 %v1379_v48, %v1299_v22  ;;  %v296_v5 = vsel %vm276_vm4, %v294_v20, %v295_v21 }
  0xdc   : > { %v544_v16 = vrot.slane %v537_v41, 1  ;;  %v541_v20 = vrot.slane %v1452_v14, 1  ;;  %v298_v60 = vsel %vm276_vm4, %v295_v21, %v297_v56  ;;  %v1584_v61 = vmul.f32 %v1359_v42, %v1402_v58 }
  0xdd   : > { %v1538_v41 = vsel %vm276_vm4, %v753_v17, %v754_v4  ;;  %v259_v17 = vsel %vm216_vm3, %v256_v12, %v258_v33  ;;  %v1591_v21 = vmul.f32 %v1354_v39, %v1281_v19  ;;  %v1595_v33 = vmul.f32 %v1362_v43, %v1299_v22 }
  0xde   : > { %357 = vrot.lane.b32.xlu0 %v352_v54, %s1932_s19  ;;  %494 = vrot.lane.b32.xlu1 %v490_v55, %s1931_s27  ;;  %v1495_v54 = vmul.f32 %v1354_v39, %v1299_v22  ;;  %v600_v55 = vrot.slane %v594_v32, 2  ;;  %v212_v56 = vmul.f32 %v1382_v49, %v1402_v58 }
  0xe0   : > { %v1509_v38 = vsel %vm276_vm4, %v600_v55, %v601_v37  ;;  %v695_v27 = vrot.slane %v1495_v54, 1  ;;  %v774_v55 = vrot.slane %v768_v18, 2  ;;  %v392_v18 = vsel %vm216_vm3, %v389_v34, %v391_v40 }
  0xe1   : > { %v211_v40 = vmul.f32 %v1382_v49, %v1299_v22 }
  0xe2   : > { %510 = vrot.lane.b32.xlu0 %v505_v7, %s1932_s19  ;;  %647 = vrot.lane.b32.xlu1 %v643_v59, %s1931_s27  ;;  %v690_v59 = vmul.f32 %v1354_v39, %v1402_v58  ;;  %v542_v7 = vrot.slane %v536_v35, 1  ;;  %v271_v39 = vmul.f32 %v1385_v50, %v1299_v22 }
  0xe4   : > { %v697_v35 = vrot.slane %v690_v59, 1  ;;  %v1548_v59 = vmul.f32 %v1359_v42, %v1299_v22 }
  0xe6   : > { %663 = vrot.lane.b32.xlu0 %v658_v15, %s1932_s19  ;;  %355 = vrot.lane.b32.xlu1 %v351_v63, %s1932_s19  ;;  %v462_v63 = vmul.f32 %v1371_v46, %v1281_v19  ;;  %v1520_v15 = vmul.f32 %v1374_v47, %v1299_v22  ;;  %v1577_v14 = vsel %vm216_vm3, %v695_v27, %v697_v35  ;;  %v410_v12 = vrot.slane %v1548_v59, 1 }
  0xe7   : > { %v366_v35 = vmul.f32 %v1388_v51, %v1299_v22  ;;  %v596_v59 = vmul.f32 %v1365_v44, %v1402_v58 }
  0xe8   : > { %v468_v8 = vrot.slane %v462_v63, 2  ;;  %v1915_v32 = vrot.slane %v1520_v15, 2  ;;  %v1914_v63 = vrot.slane %v1526_v24, 2 }
  0xea   : > { %239 = vrot.lane.b32.xlu0 %v236_v29, %s1931_s27  ;;  %508 = vrot.lane.b32.xlu1 %v504_v0, %s1932_s19  ;;  %v1532_v0 = vsel %vm276_vm4, %v468_v8, %v1916_v9  ;;  %v621_v29 = vrot.slane %v615_v6, 2  ;;  %v388_v6 = vrot.slane %v1448_v13, 1  ;;  %v1565_v13 = vsel %vm276_vm4, %v774_v55, %v1914_v63 }
  0xeb   : > { %v367_v55 = vmul.f32 %v1388_v51, %v1402_v58  ;;  %v372_v63 = vrot.slane %v366_v35, 1  ;;  %v673_v35 = vmul.f32 %v1394_v53, %v1402_v58 }
  0xec   : > { %v1553_v8 = vsel %vm276_vm4, %v621_v29, %v1915_v32  ;;  %v272_v29 = vmul.f32 %v1385_v50, %v1402_v58 }
  0xee   : > { %260 = vrot.lane.b32.xlu0 %v257_v30, %s1932_s19  ;;  %661 = vrot.lane.b32.xlu1 %v1423_v3, %s1932_s19  ;;  %v238_v30 = vsel %vm216_vm3, %v235_v11, %v237_v25  ;;  %v317_v3 = vsel %vm276_vm4, %v315_v23, %v316_v26  ;;  %v390_v11 = vsel %vm216_vm3, %v388_v6, %v389_v34  ;;  %v220_v6 = vrot.slane %v212_v56, 1 }
  0xef   : > { %v545_v25 = vsel %vm216_vm3, %v542_v7, %v544_v16  ;;  %v1580_v23 = vsel %vm216_vm3, %v541_v20, %v542_v7  ;;  %v210_v34 = vmul.f32 %v1382_v49, %v1281_v19  ;;  %v270_v7 = vmul.f32 %v1385_v50, %v1281_v19 }
  0xf0   : > { %v278_v49 = vrot.slane %v271_v39, 2  ;;  %v280_v20 = vrot.slane %v272_v29, 2  ;;  %v365_v50 = vmul.f32 %v1388_v51, %v1281_v19  ;;  %v520_v51 = vmul.f32 %v1391_v52, %v1402_v58 }
  0xf1   : > { %v217_v16 = vrot.slane %v210_v34, 1  ;;  %v374_v34 = vrot.slane %v367_v55, 1  ;;  %v672_v29 = vmul.f32 %v1394_v53, %v1299_v22 }
  0xf2   : > { %299 = vrot.lane.b32.xlu0 %v296_v5, %s1931_s27  ;;  %241 = vrot.lane.b32.xlu1 %v238_v30, %s1931_s27  ;;  %v218_v5 = vrot.slane %v211_v40, 1  ;;  %v277_v30 = vrot.slane %v270_v7, 2  ;;  %v371_v7 = vrot.slane %v365_v50, 1  ;;  %v424_v50 = vmul.f32 %v1400_v57, %v1281_v19 }
  0xf3   : > { %v1632_v56 = vsel %vm216_vm3, %v372_v63, %v374_v34 }
  0xf4   : > { %v1618_v32 = vsel %vm216_vm3, %v217_v16, %v218_v5  ;;  %v1621_v9 = vsel %vm216_vm3, %v218_v5, %v220_v6  ;;  %v1624_v40 = vsel %vm276_vm4, %v277_v30, %v278_v49  ;;  %v518_v16 = vmul.f32 %v1391_v52, %v1281_v19 }
  0xf5   : > { %v1645_v55 = vsel %vm216_vm3, %v371_v7, %v372_v63  ;;  %v527_v5 = vrot.slane %v520_v51, 1  ;;  %v671_v6 = vmul.f32 %v1394_v53, %v1281_v19  ;;  %v578_v51 = vmul.f32 %v1412_v62, %v1299_v22 }
  0xf6   : > { %320 = vrot.lane.b32.xlu0 %v317_v3, %s1932_s19  ;;  %262 = vrot.lane.b32.xlu1 %v259_v17, %s1932_s19  ;;  %v519_v3 = vmul.f32 %v1391_v52, %v1299_v22  ;;  %v1629_v17 = vsel %vm276_vm4, %v278_v49, %v280_v20  ;;  %v425_v52 = vmul.f32 %v1400_v57, %v1299_v22  ;;  %v524_v30 = vrot.slane %v518_v16, 1 }
  0xf7   : > { %v678_v49 = vrot.slane %v672_v29, 1  ;;  %v680_v20 = vrot.slane %v673_v35, 1  ;;  %v677_v63 = vrot.slane %v671_v6, 1  ;;  %v430_v29 = vrot.slane %v424_v50, 2 }
  0xf8   : > { %v525_v39 = vrot.slane %v519_v3, 1  ;;  %v431_v34 = vrot.slane %v425_v52, 2  ;;  %v731_v6 = vmul.f32 %v1420_v2, %v1299_v22 }
  0xf9   : > { %v1664_v3 = vsel %vm216_vm3, %v678_v49, %v680_v20  ;;  %v1671_v16 = vsel %vm216_vm3, %v677_v63, %v678_v49  ;;  %v412_v49 = vrot.slane %v1584_v61, 1  ;;  %v558_v20 = vmul.f32 %v1362_v43, %v1402_v58 }
  0xfa   : > { %395 = vrot.lane.b32.xlu0 %v392_v18, %s1931_s27  ;;  %301 = vrot.lane.b32.xlu1 %v298_v60, %s1931_s27  ;;  %v426_v18 = vmul.f32 %v1400_v57, %v1402_v58  ;;  %v1656_v60 = vsel %vm216_vm3, %v525_v39, %v527_v5  ;;  %v1661_v53 = vsel %vm216_vm3, %v524_v30, %v525_v39  ;;  %v584_v5 = vrot.slane %v578_v51, 2 }
  0xfb   : > { %v579_v57 = vmul.f32 %v1412_v62, %v1402_v58  ;;  %v577_v39 = vmul.f32 %v1412_v62, %v1281_v19  ;;  %v730_v62 = vmul.f32 %v1420_v2, %v1281_v19  ;;  %v694_v61 = vrot.slane %v1591_v21, 1 }
  0xfc   : > { %v433_v7 = vrot.slane %v426_v18, 2  ;;  %v737_v18 = vrot.slane %v731_v6, 2  ;;  %v708_v51 = vstv %s1651_s1  ;;  %v563_v21 = vrot.slane %v1595_v33, 1 }
  0xfd   : > { %v586_v52 = vrot.slane %v579_v57, 2  ;;  %v583_v30 = vrot.slane %v577_v39, 2  ;;  %v413_v39 = vsel %vm216_vm3, %v410_v12, %v412_v49 }
  0xfe   : > { %548 = vrot.lane.b32.xlu0 %v545_v25, %s1931_s27  ;;  %393 = vrot.lane.b32.xlu1 %v390_v11, %s1931_s27  ;;  %v1678_v35 = vsel %vm276_vm4, %v431_v34, %v433_v7  ;;  %v732_v11 = vmul.f32 %v1420_v2, %v1402_v58  ;;  %v1687_v25 = vsel %vm276_vm4, %v430_v29, %v431_v34  ;;  %v736_v2 = vrot.slane %v730_v62, 2 }
  0xff   : > { %v1699_v34 = vsel %vm276_vm4, %v584_v5, %v586_v52  ;;  %v1702_v50 = vsel %vm276_vm4, %v583_v30, %v584_v5  ;;  %v403_v7 = vmul.f32 %v1359_v42, %v1281_v19  ;;  %v696_v42 = vsel %vm216_vm3, %v694_v61, %v695_v27 }
 0x100   : > { %v739_v63 = vrot.slane %v732_v11, 2  ;;  %v1714_v57 = vsel %vm276_vm4, %v736_v2, %v737_v18  ;;  %v565_v5 = vrot.slane %v558_v20, 1  ;;  %v556_v11 = vmul.f32 %v1362_v43, %v1281_v19 }
 0x101   : > { %v409_v6 = vrot.slane %v403_v7, 1  ;;  %v440_v62 = vstv %s1684_s20  ;;  %v709_v43 = vmul.f32 %v708_v51, %v1281_v19 }
 0x102   : > { %701 = vrot.lane.b32.xlu0 %v1577_v14, %s1931_s27  ;;  %546 = vrot.lane.b32.xlu1 %v1580_v23, %s1931_s27  ;;  %v1709_v29 = vsel %vm276_vm4, %v737_v18, %v739_v63  ;;  %v710_v14 = vmul.f32 %v708_v51, %v1299_v22  ;;  %v711_v23 = vmul.f32 %v708_v51, %v1402_v58  ;;  %v562_v20 = vrot.slane %v556_v11, 1 }
 0x103   : > { %v566_v49 = vsel %vm216_vm3, %v563_v21, %v565_v5  ;;  %v411_v54 = vsel %vm216_vm3, %v409_v6, %v410_v12  ;;  %v442_v27 = vmul.f32 %v440_v62, %v1299_v22  ;;  %v443_v33 = vmul.f32 %v440_v62, %v1402_v58 }
 0x104   : > { %v716_v52 = vrot.slane %v710_v14, 1  ;;  %v718_v30 = vrot.slane %v711_v23, 1  ;;  %v564_v63 = vsel %vm216_vm3, %v562_v20, %v563_v21  ;;  %v715_v12 = vrot.slane %v709_v43, 1 }
 0x105   : > { %v448_v2 = vrot.slane %v442_v27, 2  ;;  %v450_v61 = vrot.slane %v443_v33, 2  ;;  %v441_v7 = vmul.f32 %v440_v62, %v1281_v19  ;;  %v603_v23 = vrot.slane %v596_v59, 2 }
 0x106   : > { %416 = vrot.lane.b32.xlu0 %v413_v39, %s1932_s19  ;;  %699 = vrot.lane.b32.xlu1 %v696_v42, %s1931_s27  ;;  %v719_v18 = vsel %vm216_vm3, %v716_v52, %v718_v30  ;;  %v717_v51 = vsel %vm216_vm3, %v715_v12, %v716_v52  ;;  %v749_v39 = vmul.f32 %v1368_v45, %v1402_v58  ;;  %v332_v52 = vstv %s1794_s22 }
 0x107   : > { %v451_v14 = vsel %vm276_vm4, %v448_v2, %v450_v61  ;;  %v447_v44 = vrot.slane %v441_v7, 2  ;;  %v604_v42 = vsel %vm276_vm4, %v601_v37, %v603_v23  ;;  %v311_v6 = vmul.f32 %v1347_v36, %v1402_v58 }
 0x108   : > { %v756_v5 = vrot.slane %v749_v39, 2  ;;  %v464_v37 = vmul.f32 %v1371_v46, %v1402_v58  ;;  %v1933_v46 = vrot.slane %v1503_v1, 2  ;;  %v1935_v1 = vrot.slane %v1526_v24, 2 }
 0x109   : > { %v449_v21 = vsel %vm276_vm4, %v447_v44, %v448_v2  ;;  %v318_v28 = vrot.slane %v311_v6, 2  ;;  %v334_v62 = vmul.f32 %v332_v52, %v1299_v22  ;;  %v485_v43 = vstv %s1796_s24 }
 0x10a   : > { %569 = vrot.lane.b32.xlu0 %v566_v49, %s1932_s19  ;;  %414 = vrot.lane.b32.xlu1 %v411_v54, %s1932_s19  ;;  %v757_v45 = vsel %vm276_vm4, %v754_v4, %v756_v5  ;;  %v471_v36 = vrot.slane %v464_v37, 2  ;;  %v617_v4 = vmul.f32 %v1374_v47, %v1402_v58  ;;  %v1934_v47 = vrot.slane %v1520_v15, 2 }
 0x10b   : > { %v319_v31 = vsel %vm276_vm4, %v316_v26, %v318_v28  ;;  %v333_v6 = vmul.f32 %v332_v52, %v1281_v19 }
 0x10e   : > { %722 = vrot.lane.b32.xlu0 %v719_v18, %s1932_s19  ;;  %567 = vrot.lane.b32.xlu1 %v564_v63, %s1932_s19  ;;  %v487_v18 = vmul.f32 %v485_v43, %v1299_v22 }
 0x112   : > { %454 = vrot.lane.b32.xlu0 %v451_v14, %s1931_s27  ;;  %720 = vrot.lane.b32.xlu1 %v717_v51, %s1932_s19 }
 0x116   : > { %607 = vrot.lane.b32.xlu0 %v604_v42, %s1931_s27  ;;  %452 = vrot.lane.b32.xlu1 %v449_v21, %s1931_s27 }
 0x11a   : > { %760 = vrot.lane.b32.xlu0 %v757_v45, %s1931_s27  ;;  %605 = vrot.lane.b32.xlu1 %v1509_v38, %s1931_s27  ;;  %v472_v38 = vsel %vm276_vm4, %v1933_v46, %v471_v36 }
 0x11e   : > { %473 = vrot.lane.b32.xlu0 %v1532_v0, %s1932_s19  ;;  %758 = vrot.lane.b32.xlu1 %v1538_v41, %s1931_s27  ;;  %v624_v0 = vrot.slane %v617_v4, 2  ;;  %v770_v41 = vmul.f32 %v1379_v48, %v1402_v58  ;;  %v177_v48 = vstv %s176_s21  ;;  %s1800_s27 = sld [smem:[#allocation4 + $0x180]] }
 0x11f   : > { %v178_v58 = vmul.f32 %v177_v48, %v1281_v19  ;;  %v179_v30 = vmul.f32 %v177_v48, %v1299_v22 }
 0x120   : > { %v625_v10 = vsel %vm276_vm4, %v1934_v47, %v624_v0  ;;  %v777_v26 = vrot.slane %v770_v41, 2 }
 0x122   : > { %626 = vrot.lane.b32.xlu0 %v1553_v8, %s1932_s19  ;;  %322 = vrot.lane.b32.xlu1 %v319_v31, %s1932_s19  ;;  %v778_v8 = vsel %vm276_vm4, %v1935_v1, %v777_v26 }
 0x124   : > { %v638_v12 = vstv %s1800_s27 }
 0x125   : > { %v640_v7 = vmul.f32 %v638_v12, %v1299_v22 }
 0x126   : > { %779 = vrot.lane.b32.xlu0 %v1565_v13, %s1932_s19  ;;  %475 = vrot.lane.b32.xlu1 %v472_v38, %s1932_s19 }
 0x12a   : > { %628 = vrot.lane.b32.xlu1 %v625_v10, %s1932_s19  ;;  %v639_v10 = vmul.f32 %v638_v12, %v1281_v19 }
 0x12e   : > { %781 = vrot.lane.b32.xlu1 %v778_v8, %s1932_s19  ;;  %s1936_s19 = sshll.u32 %s1247_s7, 6 }
 0x12f   : > { %s1822_s3 = scalar_lea.vmem [#allocation8], %s1936_s19 }
 0x130   : > { %s804_s16 = sshll.u32 %s1822_s3, 4  ;;  %s1852_s16 = int_to_ptr.vmem [resolvable:$true] %s804_s16 }
 0x131   : > { %s1035_s0 = scalar_lea.vmem %s1852_s16, 1024  ;;  %p1042_p11 = scmp.lt.s32.totalorder %s1852_s16, %s1040_s28 }
 0x132   : > { %p1036_p9 = scmp.ne.s32.totalorder %s1852_s16, %s1035_s0  ;;  %p1043_p13 = scmp.lt.s32.totalorder %s1041_s4, %s1035_s0 }
 0x134   : > { %p1037_p1 = pnand %p1036_p9, %p1937_p0  ;;  %p1044_p3 = por %p1043_p13, %p1042_p11 }
 0x136   : > { %p1038_p2 = pneg %p1037_p1 }
 0x138   : > { %p1045_p5 = pnand %p1044_p3, %p1038_p2 }
 0x140   : > { %v187_v15 = vpop.permute.xlu1 %186  ;;  %v201_v13 = vpop.permute.xlu0 %200 }
 0x141   : > { %v192_v11 = vadd.f32 %v187_v15, %v178_v58 }
 0x143   : > { %v206_v24 = vadd.f32 %v201_v13, %v192_v11 }
 0x144   : > { %v189_v49 = vpop.permute.xlu1 %188  ;;  %v344_v54 = vpop.permute.xlu0 %343 }
 0x145   : > { %v193_v27 = vadd.f32 %v189_v49, %v179_v30  ;;  %v348_v33 = vadd.f32 %v344_v54, %v334_v62  ;;  %v224_v20 = vadd.f32 %v1618_v32, %v206_v24 }
 0x148   : > { %v203_v63 = vpop.permute.xlu1 %202  ;;  %v497_v2 = vpop.permute.xlu0 %496 }
 0x149   : > { %v207_v61 = vadd.f32 %v203_v63, %v193_v27  ;;  %v501_v59 = vadd.f32 %v497_v2, %v487_v18 }
 0x14b   : > { %v225_v14 = vadd.f32 %v1621_v9, %v207_v61  ;;  %v486_v9 = vmul.f32 %v485_v43, %v1281_v19 }
 0x14c   : > { %v342_v51 = vpop.permute.xlu1 %341  ;;  %v650_v23 = vpop.permute.xlu0 %649 }
 0x14d   : > { %v654_v39 = vadd.f32 %v650_v23, %v640_v7  ;;  %v347_v37 = vadd.f32 %v342_v51, %v333_v6 }
 0x150   : > { %v495_v44 = vpop.permute.xlu1 %494  ;;  %v358_v42 = vpop.permute.xlu0 %357 }
 0x151   : > { %v362_v21 = vadd.f32 %v358_v42, %v348_v33  ;;  %v500_v38 = vadd.f32 %v495_v44, %v486_v9 }
 0x153   : > { %v379_v32 = vadd.f32 %v1632_v56, %v362_v21 }
 0x154   : > { %v648_v5 = vpop.permute.xlu1 %647  ;;  %v511_v45 = vpop.permute.xlu0 %510 }
 0x155   : > { %v515_v28 = vadd.f32 %v511_v45, %v501_v59  ;;  %v653_v1 = vadd.f32 %v648_v5, %v639_v10 }
 0x157   : > { %v532_v31 = vadd.f32 %v1656_v60, %v515_v28 }
 0x158   : > { %v356_v36 = vpop.permute.xlu1 %355  ;;  %v664_v22 = vpop.permute.xlu0 %663 }
 0x159   : > { %v361_v4 = vadd.f32 %v356_v36, %v347_v37  ;;  %v668_v46 = vadd.f32 %v664_v22, %v654_v39 }
 0x15b   : > { %v378_v0 = vadd.f32 %v1645_v55, %v361_v4  ;;  %v685_v41 = vadd.f32 %v1664_v3, %v668_v46 }
 0x15c   : > { %v509_v56 = vpop.permute.xlu1 %508  ;;  %v240_v47 = vpop.permute.xlu0 %239 }
 0x15d   : > { %v514_v26 = vadd.f32 %v509_v56, %v500_v38  ;;  %v245_v8 = vadd.f32 %v240_v47, %v224_v20 }
 0x15f   : > { %v531_v60 = vadd.f32 %v1661_v53, %v514_v26 }
 0x160   : > { %v662_v48 = vpop.permute.xlu1 %661  ;;  %v261_v58 = vpop.permute.xlu0 %260 }
 0x161   : > { %v667_v15 = vadd.f32 %v662_v48, %v653_v1  ;;  %v266_v13 = vadd.f32 %v261_v58, %v245_v8 }
 0x163   : > { %v284_v11 = vadd.f32 %v1624_v40, %v266_v13  ;;  %v684_v55 = vadd.f32 %v1671_v16, %v667_v15 }
 0x164   : > { %v242_v52 = vpop.permute.xlu1 %241  ;;  %v300_v3 = vpop.permute.xlu0 %299 }
 0x165   : > { %v246_v24 = vadd.f32 %v242_v52, %v225_v14  ;;  %v305_v30 = vadd.f32 %v300_v3, %v284_v11 }
 0x168   : > { %v263_v62 = vpop.permute.xlu1 %262  ;;  %v321_v19 = vpop.permute.xlu0 %320 }
 0x169   : > { %v267_v49 = vadd.f32 %v263_v62, %v246_v24  ;;  %v326_v54 = vadd.f32 %v321_v19, %v305_v30 }
 0x16b   : > { %329 = vst.msk [vmem:[%s1822_s3] sm:$0xff] %vm328_vm5, %v326_v54  ;;  %v285_v53 = vadd.f32 %v1629_v17, %v267_v49 }
 0x16c   : > { %v302_v40 = vpop.permute.xlu1 %301  ;;  %v396_v27 = vpop.permute.xlu0 %395 }
 0x16d   : > { %v400_v18 = vadd.f32 %v396_v27, %v379_v32  ;;  %v306_v47 = vadd.f32 %v302_v40, %v285_v53 }
 0x170   : > { %v394_v16 = vpop.permute.xlu1 %393  ;;  %v549_v33 = vpop.permute.xlu0 %548 }
 0x171   : > { %v399_v59 = vadd.f32 %v394_v16, %v378_v0  ;;  %v553_v12 = vadd.f32 %v549_v33, %v532_v31 }
 0x174   : > { %v547_v20 = vpop.permute.xlu1 %546  ;;  %v702_v43 = vpop.permute.xlu0 %701 }
 0x175   : > { %v552_v44 = vadd.f32 %v547_v20, %v531_v60  ;;  %v706_v17 = vadd.f32 %v702_v43, %v685_v41 }
 0x178   : > { %v700_v63 = vpop.permute.xlu1 %699  ;;  %v417_v2 = vpop.permute.xlu0 %416 }
 0x179   : > { %v421_v61 = vadd.f32 %v417_v2, %v400_v18  ;;  %v705_v28 = vadd.f32 %v700_v63, %v684_v55 }
 0x17b   : > { %v438_v7 = vadd.f32 %v1678_v35, %v421_v61 }
 0x17c   : > { %v415_v14 = vpop.permute.xlu1 %414  ;;  %v570_v51 = vpop.permute.xlu0 %569 }
 0x17d   : > { %v420_v23 = vadd.f32 %v415_v14, %v399_v59  ;;  %v574_v39 = vadd.f32 %v570_v51, %v553_v12 }
 0x17f   : > { %v437_v42 = vadd.f32 %v1687_v25, %v420_v23  ;;  %v591_v21 = vadd.f32 %v1699_v34, %v574_v39 }
 0x180   : > { %v568_v5 = vpop.permute.xlu1 %567  ;;  %v723_v45 = vpop.permute.xlu0 %722 }
 0x181   : > { %v573_v32 = vadd.f32 %v568_v5, %v552_v44  ;;  %v727_v6 = vadd.f32 %v723_v45, %v706_v17 }
 0x183   : > { %v590_v37 = vadd.f32 %v1702_v50, %v573_v32  ;;  %v744_v35 = vadd.f32 %v1709_v29, %v727_v6 }
 0x184   : > { %v721_v31 = vpop.permute.xlu1 %720  ;;  %v455_v36 = vpop.permute.xlu0 %454 }
 0x185   : > { %v726_v22 = vadd.f32 %v721_v31, %v705_v28  ;;  %v459_v1 = vadd.f32 %v455_v36, %v438_v7 }
 0x187   : > { %v743_v9 = vadd.f32 %v1714_v57, %v726_v22 }
 0x188   : > { %v453_v4 = vpop.permute.xlu1 %452  ;;  %v608_v46 = vpop.permute.xlu0 %607 }
 0x189   : > { %v458_v38 = vadd.f32 %v453_v4, %v437_v42  ;;  %v612_v13 = vadd.f32 %v608_v46, %v591_v21 }
 0x18c   : > { %v606_v25 = vpop.permute.xlu1 %605  ;;  %v761_v34 = vpop.permute.xlu0 %760 }
 0x18d   : > { %v611_v50 = vadd.f32 %v606_v25, %v590_v37  ;;  %v765_v52 = vadd.f32 %v761_v34, %v744_v35 }
 0x190   : > { %v759_v0 = vpop.permute.xlu1 %758  ;;  %v474_v41 = vpop.permute.xlu0 %473 }
 0x191   : > { %v479_v56 = vadd.f32 %v474_v41, %v458_v38  ;;  %v764_v8 = vadd.f32 %v759_v0, %v743_v9 }
 0x193   : > { %909 = vst.msk [vmem:[%s1822_s3 + $0x10] sm:$0xff] %vm328_vm5, %v479_v56 }
 0x194   : > { %v323_v29 = vpop.permute.xlu1 %322  ;;  %v627_v10 = vpop.permute.xlu0 %626 }
 0x195   : > { %v327_v57 = vadd.f32 %v323_v29, %v306_v47  ;;  %v632_v26 = vadd.f32 %v627_v10, %v611_v50 }
 0x197   : > { %330 = vst.msk [vmem:[%s1822_s3 + $0x8] sm:$0xff] %vm328_vm5, %v327_v57  ;;  %920 = vst.msk [vmem:[%s1822_s3 + $0x20] sm:$0xff] %vm328_vm5, %v632_v26 }
 0x198   : > { %v476_v60 = vpop.permute.xlu1 %475  ;;  %v780_v48 = vpop.permute.xlu0 %779 }
 0x199   : > { %v480_v58 = vadd.f32 %v476_v60, %v459_v1  ;;  %v785_v15 = vadd.f32 %v780_v48, %v764_v8 }
 0x19b   : > { %910 = vst.msk [vmem:[%s1822_s3 + $0x18] sm:$0xff] %vm328_vm5, %v480_v58  ;;  %931 = vst.msk [vmem:[%s1822_s3 + $0x30] sm:$0xff] %vm328_vm5, %v785_v15 }
 0x19c   : > { %v629_v11 = vpop.permute.xlu1 %628 }
 0x19d   : > { %v633_v55 = vadd.f32 %v629_v11, %v612_v13 }
 0x19f   : > { %921 = vst.msk [vmem:[%s1822_s3 + $0x28] sm:$0xff] %vm328_vm5, %v633_v55 }
 0x1a0   : > { %v782_v3 = vpop.permute.xlu1 %781 }
 0x1a1   : > { %v786_v24 = vadd.f32 %v782_v3, %v765_v52 }
 0x1a3   : > { %932 = vst.msk [vmem:[%s1822_s3 + $0x38] sm:$0xff] %vm328_vm5, %v786_v24 }
 0x1a4   : > { %1048 = shalt.err (!%p1045_p5)
}
 0x1a5   : > { %s1049_s5 = scalar_lea.hbm %s1850_s23, 1024  ;;  %s1053_s14 = scalar_lea.hbm %s1900_s2, 2048 }
 0x1a6   : > { %p1050_p7 = scmp.ne.s32.totalorder %s1850_s23, %s1049_s5  ;;  %p1054_p12 = scmp.lt.u32.totalorder %s1850_s23, %s1900_s2 }
 0x1a7   : > { %p1055_p4 = scmp.lt.u32.totalorder %s1053_s14, %s1049_s5  ;;  %p1057_p9 = scmp.lt.u32.totalorder %s1049_s5, %s1850_s23 }
 0x1a8   : > { %p1051_p8 = pnand %p1050_p7, %p1937_p0 }
 0x1a9   : > { %p1056_p6 = por %p1055_p4, %p1054_p12 }
 0x1aa   : > { %p1052_p10 = pneg %p1051_p8 }
 0x1ab   : > { %p1058_p1 = por %p1057_p9, %p1056_p6 }
 0x1ad   : > { %p1059_p2 = pnand %p1058_p1, %p1052_p10 }
 0x1af   : > { %1062 = shalt.err (!%p1059_p2)
}
 0x1b0   : > { %s1114_s11 = smov 128   ;;  %s1115_s12 = smov 8  }
 0x1b1   : > { %942 = dma.vmem_to_hbm [thread:$0]  (%p1937_p0), %s1852_s16, 1024, %s1850_s23, %s791_s25, %s1114_s11, %s1114_s11, %s1115_s12  }
 0x1b2 PF: > { %s1938_s13 = sld [smem:[#allocation12_spill]]  ;;  %s1939_s15 = sld [smem:[#allocation18_spill]] }
 0x1b3   : > { %s1940_s1 = sld [smem:[#allocation15_spill]] }
 0x1b8   : > { %s819_s20 = sand.u32 1, %s1938_s13   ;;  %p1941_p11 = scmp.ne.s32.totalorder %s1939_s15, 0 }
 0x1b9   : > { %p1942_p13 = scmp.ge.s32.totalorder %s1940_s1, 2  ;;  %s820_s21 = scalar_lea.sflag [#allocation7], %s819_s20 }
 0x1bb   : > { %p949_p3 = pnand %p1942_p13, %p1941_p11 }
 0x1bd   : > { %1086 = dma.done.wait (!%p949_p3), %s820_s21, 1024  }
 0x1be   : > { %1088 = vsyncadd (!%p949_p3), %s820_s21, 4294966272  ;;  %s1943_s22 = sld [smem:[#allocation16_spill]]  ;;  %s1944_s19 = sld [smem:[#allocation13_spill]] }
 0x1bf   : > { %s1945_s20 = sld [smem:[#allocation14_spill]]  ;;  %s1946_s21 = sld [smem:[#allocation17_spill]] }
 0x1c4   : > { %p19_p5 = scmp.ge.s32.totalorder %s1943_s22, 4  }
 0x1c6   :  { %21 = sbr.rel (!%p19_p5) target bundleno = 17 (0x11), region = 75 }
 0x1cd   :  { %825 = vsyncpa [#allocation6], 1 }
 0x1ce   :  { %827 = vsyncpa [#allocation6 + $0x1], 1 }
 0x1cf   :  { %828 = vsyncpa [#allocation7], 1 }
 0x1d0   :  { %830 = vsyncpa [#allocation7 + $0x1], 1 }

</bundles_post_ra>
